<compile_context>
chip_gen: v7x
topology: tpu7x:2x2x1
jax: 0.10.0
libtpu: 0.0.40
codegen_flags: <defaults>
</compile_context>

<pallas_src>
import math
from functools import partial

import jax
import jax.numpy as jnp
from jax.experimental import pallas as pl
from jax.experimental.pallas import tpu as pltpu


def _titan_kernel(eps, x_ref, wv_ref, vecs_ref, wo_ref, out_ref):
    """One grid step = `block_b` batch rows; everything stays in VMEM.

    x_ref   : (Bt, S, D) f32   input block (read straight from HBM, no pre-pass)
    wv_ref  : (D, D)     bf16  Wv / L  (value projection with the 1/L mean folded in)
    vecs_ref: (8, D)     f32   rows: [c_base, ln_gamma, ln_beta, bo, 0, 0, 0, 0]
                               c_base = bv + (1/L) * sum_p persistent_memory[p] @ Wv
    wo_ref  : (D, D)     bf16  output projection weight
    out_ref : (Bt, L, D)       per-batch-row result broadcast over the L tokens
    """
    c_base, gamma, beta, bo = vecs_ref[0], vecs_ref[1], vecs_ref[2], vecs_ref[3]

    # --- NeuralMemory.update + retrieve, fully collapsed ---
    # state0 == 0  =>  the update attention is exactly uniform, so every memory
    # row equals mean_l(v_l); the retrieve attention over identical rows is also
    # exactly uniform, so memory_output[b, l, :] == state_vec[b, :] for every l.
    # By linearity mean_l(x_l @ Wv + bv) = (sum_l x_l) @ (Wv/L) + bv, and the
    # persistent-memory part of that sum is batch-invariant (folded into c_base
    # at pack time).  Only the x part remains: one (Bt, D) @ (D, D) matmul.
    x_sum = jnp.sum(x_ref[...], axis=1)                              # (Bt, D) f32
    state_vec = c_base + jnp.dot(x_sum.astype(jnp.bfloat16), wv_ref[...],
                                 preferred_element_type=jnp.float32)

    # --- LayerNorm (norm1), centered-variance form ---
    mu = jnp.mean(state_vec, axis=-1, keepdims=True)
    cen = state_vec - mu
    var = jnp.mean(cen * cen, axis=-1, keepdims=True)
    normed = cen * jax.lax.rsqrt(var + eps) * gamma + beta

    # --- output_proj (dropout = identity in eval mode) ---
    out_vec = jnp.dot(normed.astype(jnp.bfloat16), wo_ref[...],
                      preferred_element_type=jnp.float32) + bo       # (Bt, D)

    # Every token of the combined [persistent_memory ; x] sequence receives the
    # same vector -> broadcast on the output write (writeback is the only
    # per-token cost left).
    out_ref[...] = jnp.broadcast_to(out_vec[:, None, :],
                                    out_ref.shape).astype(out_ref.dtype)


def pack_params(params, seq_len):
    """Precompute every batch-invariant piece once (outside the hot path).

    Wk/bk and Wq/bq are intentionally dropped: with the module's zero-initialised
    memory state both the update-key and retrieve-query paths are mathematically
    dead (exact-math argument; see kernel docstring / header)."""
    D = params["wv"].shape[0]
    P = params["persistent_memory"].shape[0]
    L = P + seq_len
    inv_l = 1.0 / L

    wv_scaled = (params["wv"] * inv_l).astype(jnp.bfloat16)          # Wv / L
    # c_base = bv + (1/L) * sum_p persistent_memory[p] @ Wv  (exact, f32, once)
    c_base = params["bv"] + (jnp.sum(params["persistent_memory"], axis=0)
                             @ params["wv"]) * inv_l
    zeros = jnp.zeros((D,), jnp.float32)
    vecs = jnp.stack([c_base, params["ln_gamma"], params["ln_beta"], params["bo"],
                      zeros, zeros, zeros, zeros]).astype(jnp.float32)
    return {"wv": wv_scaled, "vecs": vecs,
            "wo": params["wo"].astype(jnp.bfloat16)}, L


def _tpu_vmem_and_cores():
    """Return (vmem_capacity_bytes, assume_dual_tensorcore) with a safe fallback.

    v7x exposes 64 MiB VMEM/TC and has 2 TensorCores per chip; v5e/v6e expose
    128 MiB and have a single TC — use the VMEM size as the generation proxy."""
    try:
        cap = int(pltpu.get_tpu_info().vmem_capacity_bytes)
    except Exception:  # noqa: BLE001 - stay runnable on unusual runtimes
        cap = 64 << 20
    return cap, cap <= (64 << 20)


def _pick_block_b(B, S, L, D, budget_bytes, multi_tc):
    """Largest divisor of B whose streamed footprint fits the budget.  Keep >=2
    grid steps on dual-TC chips so both cores get work; allow grid=1 on
    single-TC chips (extra steps there are pure serial overhead)."""
    upper = max(1, B // 2) if multi_tc else B

    def step_bytes(bb):
        return (2 * bb * S * D * 4        # x block, double-buffered, f32
                + 2 * bb * L * D * 4      # out block, double-buffered, f32
                + 2 * 2 * D * D * 2       # Wv + Wo (bf16), worst case 2 buffers
                + 2 * 8 * D * 4)          # packed vectors

    block_b = 1
    for cand in range(min(upper, B), 0, -1):
        if B % cand == 0 and step_bytes(cand) <= budget_bytes:
            block_b = cand
            break
    return block_b


def memory_as_layer_titan(x, params, *, memory_size=None, eps=1e-5,
                          block_b=None, out_dtype=jnp.float32):
    """x: (B, S, D) float32.  Returns (B, P+S, D) `out_dtype` (combined sequence).

    `memory_size` is accepted for API fidelity but unused: with the module's
    zero-initialised state every memory slot holds the same vector, so the
    result is independent of the number of slots.
    TODO(synk): pass out_dtype=jnp.bfloat16 on writeback-bound v5e if the
                consumer can take bf16 (halves the dominant HBM traffic)."""
    del memory_size
    B, S, D = x.shape
    packed, L = pack_params(params, S)      # precompute once in real use
    P = L - S

    cap, multi_tc = _tpu_vmem_and_cores()
    # Generation-aware scoped-VMEM request: ~56 MiB on v7x (64 MiB/TC),
    # ~108 MiB on v5e/v6e (128 MiB) — never the full physical size.
    vmem_limit = int(cap * 0.85)
    if block_b is None:
        block_b = _pick_block_b(B, S, L, D, vmem_limit - (8 << 20), multi_tc)
    assert B % block_b == 0, "block_b must divide the batch size"
    grid = (B // block_b,)

    x_spec = pl.BlockSpec((block_b, S, D), lambda b: (b, 0, 0))
    out_spec = pl.BlockSpec((block_b, L, D), lambda b: (b, 0, 0))

    def const_spec(shape, buffered):
        idx = lambda b: (0,) * len(shape)  # noqa: E731
        if buffered:
            # Constant-index operands gain nothing from double-buffering;
            # Buffered(1) halves their VMEM footprint.
            return pl.BlockSpec(shape, idx, pipeline_mode=pl.Buffered(1))
        return pl.BlockSpec(shape, idx)

    def run(buffered):
        in_specs = [x_spec,
                    const_spec((D, D), buffered),   # Wv / L
                    const_spec((8, D), buffered),   # packed c_base/gamma/beta/bo
                    const_spec((D, D), buffered)]   # Wo
        return pl.pallas_call(
            partial(_titan_kernel, eps),
            out_shape=jax.ShapeDtypeStruct((B, L, D), out_dtype),
            grid_spec=pltpu.PrefetchScalarGridSpec(
                num_scalar_prefetch=0,
                grid=grid,
                in_specs=in_specs,
                out_specs=out_spec,
            ),
            compiler_params=pltpu.CompilerParams(
                dimension_semantics=("parallel",),
                vmem_limit_bytes=vmem_limit,
            ),
        )(x, packed["wv"], packed["vecs"], packed["wo"])

    try:
        out = run(buffered=True)
    except Exception:  # noqa: BLE001 - fall back if this build rejects Buffered(1)
        out = run(buffered=False)
    return out  # already unpadded: (B, P+S, D)


# ----------------------------- references ---------------------------------- #

def reference_forward_f32(x, params, *, memory_size, eps=1e-5):
    """Pure-JAX f32 reference with the FULL (un-simplified) NeuralMemory math,
    mirroring the PyTorch eval-mode semantics (uses Wk/bk/Wq/bq, the full memory
    state, and the retrieve attention).  The kernel drops all of that because
    the zero-initialised state makes those paths exactly uniform."""
    B, S, D = x.shape
    pm = params["persistent_memory"]
    xc = jnp.concatenate([jnp.broadcast_to(pm[None], (B, pm.shape[0], D)), x], axis=1)
    scale = 1.0 / math.sqrt(D)

    k = xc @ params["wk"] + params["bk"]
    v = xc @ params["wv"] + params["bv"]
    state0 = jnp.zeros((B, memory_size, D), jnp.float32)
    attn_u = jax.nn.softmax(jnp.einsum("bmd,bld->bml", state0, k) * scale, axis=-1)
    state = state0 + jnp.einsum("bml,bld->bmd", attn_u, v)

    q = xc @ params["wq"] + params["bq"]
    attn_r = jax.nn.softmax(jnp.einsum("bld,bmd->blm", q, state) * scale, axis=-1)
    mem_out = jnp.einsum("blm,bmd->bld", attn_r, state)

    mu = jnp.mean(mem_out, axis=-1, keepdims=True)
    var = jnp.mean((mem_out - mu) ** 2, axis=-1, keepdims=True)
    normed = (mem_out - mu) / jnp.sqrt(var + eps) * params["ln_gamma"] + params["ln_beta"]
    return normed @ params["wo"] + params["bo"]


def reference_forward_collapsed(x, params, *, eps=1e-5):
    """Mirror of the kernel numerics (collapsed math, bf16 matmul operands with
    f32 accumulation, centered-variance LayerNorm) for a tight check."""
    B, S, D = x.shape
    packed, L = pack_params(params, S)
    c_base, gamma = packed["vecs"][0], packed["vecs"][1]
    beta, bo = packed["vecs"][2], packed["vecs"][3]

    x_sum = jnp.sum(x, axis=1)                                       # (B, D) f32
    state_vec = c_base + jnp.dot(x_sum.astype(jnp.bfloat16), packed["wv"],
                                 preferred_element_type=jnp.float32)
    mu = jnp.mean(state_vec, axis=-1, keepdims=True)
    cen = state_vec - mu
    var = jnp.mean(cen * cen, axis=-1, keepdims=True)
    normed = cen * jax.lax.rsqrt(var + eps) * gamma + beta
    out_vec = jnp.dot(normed.astype(jnp.bfloat16), packed["wo"],
                      preferred_element_type=jnp.float32) + bo
    return jnp.broadcast_to(out_vec[:, None, :], (B, L, D))


def init_params(key, dim, num_persistent_memory):
    ks = jax.random.split(key, 8)
    s = 1.0 / math.sqrt(dim)
    return {
        "persistent_memory": jax.random.normal(ks[0], (num_persistent_memory, dim), jnp.float32),
        "wk": jax.random.uniform(ks[1], (dim, dim), jnp.float32, -s, s),
        "bk": jax.random.uniform(ks[2], (dim,), jnp.float32, -s, s),
        "wv": jax.random.uniform(ks[3], (dim, dim), jnp.float32, -s, s),
        "bv": jax.random.uniform(ks[4], (dim,), jnp.float32, -s, s),
        "wq": jax.random.uniform(ks[5], (dim, dim), jnp.float32, -s, s),
        "bq": jax.random.uniform(ks[6], (dim,), jnp.float32, -s, s),
        "ln_gamma": jnp.ones((dim,), jnp.float32),
        "ln_beta": jnp.zeros((dim,), jnp.float32),
        "wo": jax.random.uniform(ks[7], (dim, dim), jnp.float32, -s, s),
        "bo": jnp.zeros((dim,), jnp.float32),
    }


if __name__ == "__main__":
    B, S, D = 4, 16, 32   # small shapes; D deliberately not a multiple of 128
    P = 16                # num_persistent_memory
    M = 16                # memory_size (result is independent of it; see wrapper)

    key = jax.random.PRNGKey(0)
    kx, kp = jax.random.split(key)
    x = jax.random.normal(kx, (B, S, D), jnp.float32)
    params = init_params(kp, D, P)

    out = memory_as_layer_titan(x, params, memory_size=M)
    out = jax.block_until_ready(out)
    assert out.shape == (B, P + S, D)

    ref_tight = reference_forward_collapsed(x, params)
    ref_full = reference_forward_f32(x, params, memory_size=M)
    assert jnp.allclose(out, ref_tight, atol=1e-2, rtol=1e-2), \
        "mismatch vs kernel-matched (collapsed, bf16-matmul) reference"
    assert jnp.allclose(out, ref_full, atol=5e-2, rtol=5e-2), \
        "mismatch vs full (un-simplified) f32 reference"

    print("KERNEL_OK")
</pallas_src>

<mosaic_0001>
module attributes {stable_mosaic.version = 11 : i64} {
  func.func @_titan_kernel(%arg0: i32, %arg1: memref<2x16x32xf32, #tpu.memory_space<vmem>>, %arg2: memref<32x32xbf16, #tpu.memory_space<vmem>>, %arg3: memref<8x32xf32, #tpu.memory_space<vmem>>, %arg4: memref<32x32xbf16, #tpu.memory_space<vmem>>, %arg5: memref<2x32x32xf32, #tpu.memory_space<vmem>>) attributes {dimension_semantics = [#tpu.dimension_semantics<parallel>], iteration_bounds = array<i64: 2>, scalar_prefetch = 0 : i64, scratch_operands = 0 : i64, tpu.core_type = #tpu.core_type<tc>, window_params = [{transform_indices = @transform_0, window_bounds = array<i64: 2, 16, 32>}, {pipeline_mode = #tpu.pipeline_mode<synchronous>, transform_indices = @transform_1, window_bounds = array<i64: 32, 32>}, {pipeline_mode = #tpu.pipeline_mode<synchronous>, transform_indices = @transform_2, window_bounds = array<i64: 8, 32>}, {pipeline_mode = #tpu.pipeline_mode<synchronous>, transform_indices = @transform_3, window_bounds = array<i64: 32, 32>}, {transform_indices = @transform_4, window_bounds = array<i64: 2, 32, 32>}]} {
    %c0 = arith.constant 0 : index
    %c0_0 = arith.constant 0 : index
    %0 = vector.load %arg3[%c0, %c0_0] : memref<8x32xf32, #tpu.memory_space<vmem>>, vector<1x32xf32>
    %1 = vector.shape_cast %0 : vector<1x32xf32> to vector<32xf32>
    %c1 = arith.constant 1 : index
    %c0_1 = arith.constant 0 : index
    %2 = vector.load %arg3[%c1, %c0_1] : memref<8x32xf32, #tpu.memory_space<vmem>>, vector<1x32xf32>
    %3 = vector.shape_cast %2 : vector<1x32xf32> to vector<32xf32>
    %c2 = arith.constant 2 : index
    %c0_2 = arith.constant 0 : index
    %4 = vector.load %arg3[%c2, %c0_2] : memref<8x32xf32, #tpu.memory_space<vmem>>, vector<1x32xf32>
    %5 = vector.shape_cast %4 : vector<1x32xf32> to vector<32xf32>
    %c3 = arith.constant 3 : index
    %c0_3 = arith.constant 0 : index
    %6 = vector.load %arg3[%c3, %c0_3] : memref<8x32xf32, #tpu.memory_space<vmem>>, vector<1x32xf32>
    %7 = vector.shape_cast %6 : vector<1x32xf32> to vector<32xf32>
    %c0_4 = arith.constant 0 : index
    %c0_5 = arith.constant 0 : index
    %c0_6 = arith.constant 0 : index
    %8 = vector.load %arg1[%c0_4, %c0_5, %c0_6] : memref<2x16x32xf32, #tpu.memory_space<vmem>>, vector<2x16x32xf32>
    %cst = arith.constant dense<0.000000e+00> : vector<2x32xf32>
    %9 = vector.multi_reduction <add>, %8, %cst [1] : vector<2x16x32xf32> to vector<2x32xf32>
    %10 = arith.truncf %9 : vector<2x32xf32> to vector<2x32xbf16>
    %c0_7 = arith.constant 0 : index
    %c0_8 = arith.constant 0 : index
    %11 = vector.load %arg2[%c0_7, %c0_8] : memref<32x32xbf16, #tpu.memory_space<vmem>>, vector<32x32xbf16>
    %cst_9 = arith.constant dense<0.000000e+00> : vector<2x32xf32>
    %12 = tpu.matmul %10, %11, %cst_9 {dimension_numbers = #tpu.dot_dimension_numbers<[1], [0], [0], [1], [0, 0, 1, 1], [], []>} : vector<2x32xbf16>, vector<32x32xbf16>, vector<2x32xf32> -> vector<2x32xf32>
    %13 = vector.shape_cast %1 : vector<32xf32> to vector<1x32xf32>
    %14 = vector.broadcast %13 : vector<1x32xf32> to vector<2x32xf32>
    %15 = arith.addf %14, %12 : vector<2x32xf32>
    %cst_10 = arith.constant dense<0.000000e+00> : vector<2xf32>
    %16 = vector.multi_reduction <add>, %15, %cst_10 [1] : vector<2x32xf32> to vector<2xf32>
    %17 = vector.shape_cast %16 : vector<2xf32> to vector<2x1xf32>
    %cst_11 = arith.constant 3.200000e+01 : f32
    %18 = vector.broadcast %cst_11 : f32 to vector<2x1xf32>
    %19 = arith.divf %17, %18 : vector<2x1xf32>
    %20 = vector.broadcast %19 : vector<2x1xf32> to vector<2x32xf32>
    %21 = arith.subf %15, %20 : vector<2x32xf32>
    %22 = arith.mulf %21, %21 : vector<2x32xf32>
    %cst_12 = arith.constant dense<0.000000e+00> : vector<2xf32>
    %23 = vector.multi_reduction <add>, %22, %cst_12 [1] : vector<2x32xf32> to vector<2xf32>
    %24 = vector.shape_cast %23 : vector<2xf32> to vector<2x1xf32>
    %cst_13 = arith.constant 3.200000e+01 : f32
    %25 = vector.broadcast %cst_13 : f32 to vector<2x1xf32>
    %26 = arith.divf %24, %25 : vector<2x1xf32>
    %cst_14 = arith.constant 9.99999974E-6 : f32
    %27 = vector.broadcast %cst_14 : f32 to vector<2x1xf32>
    %28 = arith.addf %26, %27 : vector<2x1xf32>
    %29 = math.rsqrt %28 : vector<2x1xf32>
    %30 = vector.broadcast %29 : vector<2x1xf32> to vector<2x32xf32>
    %31 = arith.mulf %21, %30 : vector<2x32xf32>
    %32 = vector.shape_cast %3 : vector<32xf32> to vector<1x32xf32>
    %33 = vector.broadcast %32 : vector<1x32xf32> to vector<2x32xf32>
    %34 = arith.mulf %31, %33 : vector<2x32xf32>
    %35 = vector.shape_cast %5 : vector<32xf32> to vector<1x32xf32>
    %36 = vector.broadcast %35 : vector<1x32xf32> to vector<2x32xf32>
    %37 = arith.addf %34, %36 : vector<2x32xf32>
    %38 = arith.truncf %37 : vector<2x32xf32> to vector<2x32xbf16>
    %c0_15 = arith.constant 0 : index
    %c0_16 = arith.constant 0 : index
    %39 = vector.load %arg4[%c0_15, %c0_16] : memref<32x32xbf16, #tpu.memory_space<vmem>>, vector<32x32xbf16>
    %cst_17 = arith.constant dense<0.000000e+00> : vector<2x32xf32>
    %40 = tpu.matmul %38, %39, %cst_17 {dimension_numbers = #tpu.dot_dimension_numbers<[1], [0], [0], [1], [0, 0, 1, 1], [], []>} : vector<2x32xbf16>, vector<32x32xbf16>, vector<2x32xf32> -> vector<2x32xf32>
    %41 = vector.shape_cast %7 : vector<32xf32> to vector<1x32xf32>
    %42 = vector.broadcast %41 : vector<1x32xf32> to vector<2x32xf32>
    %43 = arith.addf %40, %42 : vector<2x32xf32>
    %44 = vector.shape_cast %43 : vector<2x32xf32> to vector<2x1x32xf32>
    %45 = vector.shape_cast %44 : vector<2x1x32xf32> to vector<2x1x32xf32>
    %46 = vector.broadcast %45 : vector<2x1x32xf32> to vector<2x32x32xf32>
    %c0_18 = arith.constant 0 : index
    %c0_19 = arith.constant 0 : index
    %c0_20 = arith.constant 0 : index
    %47 = vector.load %arg5[%c0_18, %c0_19, %c0_20] : memref<2x32x32xf32, #tpu.memory_space<vmem>>, vector<2x32x32xf32>
    tpu.vector_store %arg5[%c0_18, %c0_19, %c0_20], %46 {strides = array<i32>} : memref<2x32x32xf32, #tpu.memory_space<vmem>>, vector<2x32x32xf32>,
    return
  }
  func.func @transform_0(%arg0: i32) -> (i32, i32, i32) {
    %c0_i32 = arith.constant 0 : i32
    %c0_i32_0 = arith.constant 0 : i32
    %c0_i32_1 = arith.constant 0 : i32
    return %arg0, %c0_i32, %c0_i32_0 : i32, i32, i32
  }
  func.func @transform_1(%arg0: i32) -> (i32, i32) {
    %c0_i32 = arith.constant 0 : i32
    %c0_i32_0 = arith.constant 0 : i32
    %c0_i32_1 = arith.constant 0 : i32
    return %c0_i32, %c0_i32_0 : i32, i32
  }
  func.func @transform_2(%arg0: i32) -> (i32, i32) {
    %c0_i32 = arith.constant 0 : i32
    %c0_i32_0 = arith.constant 0 : i32
    %c0_i32_1 = arith.constant 0 : i32
    return %c0_i32, %c0_i32_0 : i32, i32
  }
  func.func @transform_3(%arg0: i32) -> (i32, i32) {
    %c0_i32 = arith.constant 0 : i32
    %c0_i32_0 = arith.constant 0 : i32
    %c0_i32_1 = arith.constant 0 : i32
    return %c0_i32, %c0_i32_0 : i32, i32
  }
  func.func @transform_4(%arg0: i32) -> (i32, i32, i32) {
    %c0_i32 = arith.constant 0 : i32
    %c0_i32_0 = arith.constant 0 : i32
    %c0_i32_1 = arith.constant 0 : i32
    return %arg0, %c0_i32, %c0_i32_0 : i32, i32, i32
  }
}

module attributes {stable_mosaic.version = 11 : i64} {
  func.func @_titan_kernel(%arg0: i32, %arg1: memref<2x16x32xf32, #tpu.memory_space<vmem>>, %arg2: memref<32x32xbf16, #tpu.memory_space<vmem>>, %arg3: memref<8x32xf32, #tpu.memory_space<vmem>>, %arg4: memref<32x32xbf16, #tpu.memory_space<vmem>>, %arg5: memref<2x32x32xf32, #tpu.memory_space<vmem>>) attributes {dimension_semantics = [#tpu.dimension_semantics<parallel>], iteration_bounds = array<i64: 2>, scalar_prefetch = 0 : i64, scratch_operands = 0 : i64, tpu.core_type = #tpu.core_type<tc>, window_params = [{transform_indices = @transform_0, window_bounds = array<i64: 2, 16, 32>}, {pipeline_mode = #tpu.pipeline_mode<synchronous>, transform_indices = @transform_1, window_bounds = array<i64: 32, 32>}, {pipeline_mode = #tpu.pipeline_mode<synchronous>, transform_indices = @transform_2, window_bounds = array<i64: 8, 32>}, {pipeline_mode = #tpu.pipeline_mode<synchronous>, transform_indices = @transform_3, window_bounds = array<i64: 32, 32>}, {transform_indices = @transform_4, window_bounds = array<i64: 2, 32, 32>}]} {
    %c0 = arith.constant 0 : index
    %c0_0 = arith.constant 0 : index
    %0 = vector.load %arg3[%c0, %c0_0] : memref<8x32xf32, #tpu.memory_space<vmem>>, vector<1x32xf32>
    %1 = vector.shape_cast %0 : vector<1x32xf32> to vector<32xf32>
    %c1 = arith.constant 1 : index
    %c0_1 = arith.constant 0 : index
    %2 = vector.load %arg3[%c1, %c0_1] : memref<8x32xf32, #tpu.memory_space<vmem>>, vector<1x32xf32>
    %3 = vector.shape_cast %2 : vector<1x32xf32> to vector<32xf32>
    %c2 = arith.constant 2 : index
    %c0_2 = arith.constant 0 : index
    %4 = vector.load %arg3[%c2, %c0_2] : memref<8x32xf32, #tpu.memory_space<vmem>>, vector<1x32xf32>
    %5 = vector.shape_cast %4 : vector<1x32xf32> to vector<32xf32>
    %c3 = arith.constant 3 : index
    %c0_3 = arith.constant 0 : index
    %6 = vector.load %arg3[%c3, %c0_3] : memref<8x32xf32, #tpu.memory_space<vmem>>, vector<1x32xf32>
    %7 = vector.shape_cast %6 : vector<1x32xf32> to vector<32xf32>
    %c0_4 = arith.constant 0 : index
    %c0_5 = arith.constant 0 : index
    %c0_6 = arith.constant 0 : index
    %8 = vector.load %arg1[%c0_4, %c0_5, %c0_6] : memref<2x16x32xf32, #tpu.memory_space<vmem>>, vector<2x16x32xf32>
    %cst = arith.constant dense<0.000000e+00> : vector<2x32xf32>
    %9 = vector.multi_reduction <add>, %8, %cst [1] : vector<2x16x32xf32> to vector<2x32xf32>
    %10 = arith.truncf %9 : vector<2x32xf32> to vector<2x32xbf16>
    %c0_7 = arith.constant 0 : index
    %c0_8 = arith.constant 0 : index
    %11 = vector.load %arg2[%c0_7, %c0_8] : memref<32x32xbf16, #tpu.memory_space<vmem>>, vector<32x32xbf16>
    %cst_9 = arith.constant dense<0.000000e+00> : vector<2x32xf32>
    %12 = tpu.matmul %10, %11, %cst_9 {dimension_numbers = #tpu.dot_dimension_numbers<[1], [0], [0], [1], [0, 0, 1, 1], [], []>} : vector<2x32xbf16>, vector<32x32xbf16>, vector<2x32xf32> -> vector<2x32xf32>
    %13 = vector.shape_cast %1 : vector<32xf32> to vector<1x32xf32>
    %14 = vector.broadcast %13 : vector<1x32xf32> to vector<2x32xf32>
    %15 = arith.addf %14, %12 : vector<2x32xf32>
    %cst_10 = arith.constant dense<0.000000e+00> : vector<2xf32>
    %16 = vector.multi_reduction <add>, %15, %cst_10 [1] : vector<2x32xf32> to vector<2xf32>
    %17 = vector.shape_cast %16 : vector<2xf32> to vector<2x1xf32>
    %cst_11 = arith.constant 3.200000e+01 : f32
    %18 = vector.broadcast %cst_11 : f32 to vector<2x1xf32>
    %19 = arith.divf %17, %18 : vector<2x1xf32>
    %20 = vector.broadcast %19 : vector<2x1xf32> to vector<2x32xf32>
    %21 = arith.subf %15, %20 : vector<2x32xf32>
    %22 = arith.mulf %21, %21 : vector<2x32xf32>
    %cst_12 = arith.constant dense<0.000000e+00> : vector<2xf32>
    %23 = vector.multi_reduction <add>, %22, %cst_12 [1] : vector<2x32xf32> to vector<2xf32>
    %24 = vector.shape_cast %23 : vector<2xf32> to vector<2x1xf32>
    %cst_13 = arith.constant 3.200000e+01 : f32
    %25 = vector.broadcast %cst_13 : f32 to vector<2x1xf32>
    %26 = arith.divf %24, %25 : vector<2x1xf32>
    %cst_14 = arith.constant 9.99999974E-6 : f32
    %27 = vector.broadcast %cst_14 : f32 to vector<2x1xf32>
    %28 = arith.addf %26, %27 : vector<2x1xf32>
    %29 = math.rsqrt %28 : vector<2x1xf32>
    %30 = vector.broadcast %29 : vector<2x1xf32> to vector<2x32xf32>
    %31 = arith.mulf %21, %30 : vector<2x32xf32>
    %32 = vector.shape_cast %3 : vector<32xf32> to vector<1x32xf32>
    %33 = vector.broadcast %32 : vector<1x32xf32> to vector<2x32xf32>
    %34 = arith.mulf %31, %33 : vector<2x32xf32>
    %35 = vector.shape_cast %5 : vector<32xf32> to vector<1x32xf32>
    %36 = vector.broadcast %35 : vector<1x32xf32> to vector<2x32xf32>
    %37 = arith.addf %34, %36 : vector<2x32xf32>
    %38 = arith.truncf %37 : vector<2x32xf32> to vector<2x32xbf16>
    %c0_15 = arith.constant 0 : index
    %c0_16 = arith.constant 0 : index
    %39 = vector.load %arg4[%c0_15, %c0_16] : memref<32x32xbf16, #tpu.memory_space<vmem>>, vector<32x32xbf16>
    %cst_17 = arith.constant dense<0.000000e+00> : vector<2x32xf32>
    %40 = tpu.matmul %38, %39, %cst_17 {dimension_numbers = #tpu.dot_dimension_numbers<[1], [0], [0], [1], [0, 0, 1, 1], [], []>} : vector<2x32xbf16>, vector<32x32xbf16>, vector<2x32xf32> -> vector<2x32xf32>
    %41 = vector.shape_cast %7 : vector<32xf32> to vector<1x32xf32>
    %42 = vector.broadcast %41 : vector<1x32xf32> to vector<2x32xf32>
    %43 = arith.addf %40, %42 : vector<2x32xf32>
    %44 = vector.shape_cast %43 : vector<2x32xf32> to vector<2x1x32xf32>
    %45 = vector.shape_cast %44 : vector<2x1x32xf32> to vector<2x1x32xf32>
    %46 = vector.broadcast %45 : vector<2x1x32xf32> to vector<2x32x32xf32>
    %c0_18 = arith.constant 0 : index
    %c0_19 = arith.constant 0 : index
    %c0_20 = arith.constant 0 : index
    %47 = vector.load %arg5[%c0_18, %c0_19, %c0_20] : memref<2x32x32xf32, #tpu.memory_space<vmem>>, vector<2x32x32xf32>
    tpu.vector_store %arg5[%c0_18, %c0_19, %c0_20], %46 {strides = array<i32>} : memref<2x32x32xf32, #tpu.memory_space<vmem>>, vector<2x32x32xf32>,
    return
  }
  func.func @transform_0(%arg0: i32) -> (i32, i32, i32) {
    %c0_i32 = arith.constant 0 : i32
    %c0_i32_0 = arith.constant 0 : i32
    %c0_i32_1 = arith.constant 0 : i32
    return %arg0, %c0_i32, %c0_i32_0 : i32, i32, i32
  }
  func.func @transform_1(%arg0: i32) -> (i32, i32) {
    %c0_i32 = arith.constant 0 : i32
    %c0_i32_0 = arith.constant 0 : i32
    %c0_i32_1 = arith.constant 0 : i32
    return %c0_i32, %c0_i32_0 : i32, i32
  }
  func.func @transform_2(%arg0: i32) -> (i32, i32) {
    %c0_i32 = arith.constant 0 : i32
    %c0_i32_0 = arith.constant 0 : i32
    %c0_i32_1 = arith.constant 0 : i32
    return %c0_i32, %c0_i32_0 : i32, i32
  }
  func.func @transform_3(%arg0: i32) -> (i32, i32) {
    %c0_i32 = arith.constant 0 : i32
    %c0_i32_0 = arith.constant 0 : i32
    %c0_i32_1 = arith.constant 0 : i32
    return %c0_i32, %c0_i32_0 : i32, i32
  }
  func.func @transform_4(%arg0: i32) -> (i32, i32, i32) {
    %c0_i32 = arith.constant 0 : i32
    %c0_i32_0 = arith.constant 0 : i32
    %c0_i32_1 = arith.constant 0 : i32
    return %arg0, %c0_i32, %c0_i32_0 : i32, i32, i32
  }
}

</mosaic_0001>

<bundles_post_ra>
// kernel: tpu_custom_call.1
= control target key start
LH: loop header
LB: loop body
LE: loop exit
PB: predicated region body
PF: predicated region fallthrough
CT: control target
= control target key end

     0   :  { %9 = vsyncpa [#allocation3], 0  ;;  %s1268_s0 = inlined_call_operand.hbm [shape: f32[4,16,32], index: 0, kind: input, shape index: {}]   ;;  %s1269_s1 = inlined_call_operand.hbm [shape: bf16[32,32], index: 1, kind: input, shape index: {}]   ;;  %s1270_s2 = inlined_call_operand.hbm [shape: f32[8,32], index: 2, kind: input, shape index: {}]   ;;  %s1271_s3 = inlined_call_operand.hbm [shape: bf16[32,32], index: 3, kind: input, shape index: {}]   ;;  %s1272_s4 = inlined_call_operand.hbm [shape: f32[4,32,32], index: 4, kind: output, shape index: {}]  }
   0x1   :  { %11 = vsyncpa [#allocation3 + $0x1], 0 }
   0x2   :  { %12 = vsyncpa [#allocation6], 0 }
   0x3   :  { %13 = vsyncpa [#allocation9], 0 }
   0x4   :  { %14 = vsyncpa [#allocation4], 0 }
   0x5   :  { %16 = vsyncpa [#allocation4 + $0x1], 0  ;;  %s988_s15 = smov 0   ;;  %s990_s16 = smov 0  }
   0x6   :  { %s992_s17 = smov 0   ;;  %s994_s18 = smov 0  }
   0x7 LB: > { %s1009_s19 = sadd.s32 4294967295, %s947_s18   ;;  %s609_s20 = sadd.s32 4294967294, %s947_s18   ;;  %s947_s18 = sphi %s994_s18, %s1295_s18   ;;  %s943_s17 = sphi %s992_s17, %s1294_s17   ;;  %s939_s16 = sphi %s990_s16, %s1293_s16   ;;  %s935_s15 = sphi %s988_s15, %s1292_s15  }
   0x8   : > { %p42_p0 = scmp.ne.s32.totalorder %s939_s16, %s935_s15  ;;  %p1273_p1 = scmp.eq.s32.totalorder %s1009_s19, 0 }
   0x9   : > { %p135_p3 = scmp.eq.s32.totalorder %s609_s20, 1  ;;  %p610_p5 = scmp.ge.s32.totalorder %s947_s18, 1 }
   0xa   : > { %p1018_p4 = por %p1273_p1, %p42_p0  ;;  %p142_p7 = scmp.lt.s32.totalorder %s947_s18, 3 }
   0xb   : > { %p1023_p6 = por %p135_p3, %p42_p0  ;;  %s949_s24 = smov [#allocation5]  }
   0xc   : > { %s1276_s21 = scalar_select %p1018_p4, 1, 0 }
   0xd   : > { %s1277_s22 = scalar_select %p1023_p6, 1, 0 }
   0xe   : > { %p1028_p8 = pnand %p610_p5, %p142_p7  ;;  %s154_s25 = sshll.u32 %s949_s24, 4  ;;  %s1032_s25 = int_to_ptr.vmem [resolvable:$true] %s154_s25 }
   0xf   : > { %s950_s27 = smov [#allocation7]   ;;  %s951_s29 = smov [#allocation8]  }
  0x10   : > { %s1278_s23 = scalar_select %p1028_p8, 1, 0 }
  0x11   : > { %p683_p9 = pneg %p1028_p8  ;;  %s168_s28 = sshll.u32 %s950_s27, 4  ;;  %s1043_s28 = int_to_ptr.vmem [resolvable:$true] %s168_s28 }
  0x12   : > { %s1045_s30 = sshll.u32 %s951_s29, 4  ;;  %s759_s7 = scalar_lea.hbm %s1269_s1, 256  ;;  %s179_s30 = int_to_ptr.vmem [resolvable:$true] %s1045_s30 }
  0x13   : > { %p1039_p11 = pnand %p683_p9, %p1273_p1  ;;  %p760_p12 = scmp.ne.s32.totalorder %s1269_s1, %s759_s7 }
  0x14   : > { %p766_p5 = scmp.lt.u32.totalorder %s759_s7, %s1269_s1 }
  0x15   : > { %p1055_p13 = pneg %p1039_p11 }
  0x17   : > { %p762_p0 = pnand %p1055_p13, %p760_p12 }
  0x19   : > { %p763_p3 = pneg %p762_p0 }
  0x1b   : > { %p768_p7 = pnand %p766_p5, %p763_p3 }
  0x1d   : > { %771 = shalt.err (!%p768_p7)
}
  0x1e   : > { %s772_s13 = scalar_lea.vmem %s1032_s25, 256  ;;  %p780_p2 = scmp.lt.s32.totalorder %s1032_s25, %s1032_s25 }
  0x1f   : > { %p773_p9 = scmp.ne.s32.totalorder %s1032_s25, %s772_s13  ;;  %p781_p6 = scmp.lt.s32.totalorder %s772_s13, %s772_s13 }
  0x21   : > { %p775_p10 = pnand %p773_p9, %p1055_p13  ;;  %p782_p12 = por %p781_p6, %p780_p2 }
  0x23   : > { %p776_p1 = pneg %p775_p10 }
  0x25   : > { %p783_p0 = pnand %p782_p12, %p776_p1 }
  0x27   : > { %786 = shalt.err (!%p783_p0)
}
  0x28   : > { %s952_s14 = smov 64   ;;  %s953_s20 = smov 4  }
  0x29   : > { %686 = dma.hbm_to_vmem [thread:$0]  (!%p1039_p11), %s1269_s1, 256, %s1032_s25, [#allocation6], %s952_s14, %s952_s14, %s953_s20  }
  0x2a   : > { %s787_s6 = scalar_lea.hbm %s1270_s2, 128 }
  0x2b   : > { %p788_p1 = scmp.ne.s32.totalorder %s1270_s2, %s787_s6  ;;  %p794_p10 = scmp.lt.u32.totalorder %s787_s6, %s1270_s2 }
  0x2d   : > { %p790_p2 = pnand %p788_p1, %p1055_p13 }
  0x2f   : > { %p791_p6 = pneg %p790_p2 }
  0x31   : > { %p796_p3 = pnand %p794_p10, %p791_p6 }
  0x33   : > { %799 = shalt.err (!%p796_p3)
}
  0x34   : > { %s800_s25 = scalar_lea.vmem %s1043_s28, 128  ;;  %p808_p12 = scmp.lt.s32.totalorder %s1043_s28, %s1043_s28 }
  0x35   : > { %p801_p5 = scmp.ne.s32.totalorder %s1043_s28, %s800_s25  ;;  %p809_p0 = scmp.lt.s32.totalorder %s800_s25, %s800_s25 }
  0x37   : > { %p803_p7 = pnand %p801_p5, %p1055_p13  ;;  %p810_p1 = por %p809_p0, %p808_p12 }
  0x39   : > { %p804_p9 = pneg %p803_p7 }
  0x3b   : > { %p811_p2 = pnand %p810_p1, %p804_p9 }
  0x3d   : > { %814 = shalt.err (!%p811_p2)
}
  0x3e   : > { %689 = dma.hbm_to_vmem [thread:$0]  (!%p1039_p11), %s1270_s2, 128, %s1043_s28, [#allocation6]  }
  0x3f   : > { %s815_s29 = scalar_lea.hbm %s1271_s3, 256 }
  0x40   : > { %p816_p6 = scmp.ne.s32.totalorder %s1271_s3, %s815_s29  ;;  %p822_p5 = scmp.lt.u32.totalorder %s815_s29, %s1271_s3 }
  0x42   : > { %p818_p10 = pnand %p816_p6, %p1055_p13 }
  0x44   : > { %p819_p3 = pneg %p818_p10 }
  0x46   : > { %p824_p7 = pnand %p822_p5, %p819_p3 }
  0x48   : > { %827 = shalt.err (!%p824_p7)
}
  0x49   : > { %s828_s9 = scalar_lea.vmem %s179_s30, 256  ;;  %p836_p1 = scmp.lt.s32.totalorder %s179_s30, %s179_s30 }
  0x4a   : > { %p829_p9 = scmp.ne.s32.totalorder %s179_s30, %s828_s9  ;;  %p837_p2 = scmp.lt.s32.totalorder %s828_s9, %s828_s9 }
  0x4c   : > { %p831_p12 = pnand %p829_p9, %p1055_p13  ;;  %p838_p4 = por %p837_p2, %p836_p1 }
  0x4e   : > { %p832_p0 = pneg %p831_p12 }
  0x50   : > { %p839_p8 = pnand %p838_p4, %p832_p0 }
  0x52   : > { %842 = shalt.err (!%p839_p8)
}
  0x53   : > { %692 = dma.hbm_to_vmem [thread:$0]  (!%p1039_p11), %s1271_s3, 256, %s179_s30, [#allocation9], %s952_s14, %s952_s14, %s953_s20  }
  0x54   : > { %s1125_s10 = sadd.s32 1, %s947_s18   ;;  %s29_s25 = sadd.s32 1, %s943_s17 }
  0x55   : > { %s26_s26 = ssub.s32 %s947_s18, %s1125_s10  ;;  %p36_p8 = scmp.ne.s32.totalorder %s943_s17, %s939_s16 }
  0x56   : > { %p27_p4 = scmp.eq.s32.totalorder %s26_s26, 0  ;;  %p37_p13 = scmp.eq.s32.totalorder %s947_s18, 0 }
  0x57   : > { %p704_p6 = scmp.lt.s32.totalorder %s947_s18, 2  ;;  %p1281_p3 = scmp.eq.s32.totalorder %s1009_s19, 1 }
  0x58   : > { %s1135_s12 = scalar_select %p27_p4, %s943_s17, %s29_s25  }
  0x59   : > { %p38_p10 = por %p37_p13, %p36_p8  ;;  %p1139_p5 = por %p1281_p3, %p36_p8 }
  0x5a   : > { %s192_s24 = sand.u32 1, %s943_s17   ;;  %s642_s27 = sshll.u32 %s947_s18, 9 }
  0x5b   : > { %s615_s30 = sshll.u32 %s192_s24, 5  ;;  %s1148_s29 = scalar_lea.hbm %s1268_s0, %s642_s27 }
  0x5c   : > { %s196_s5 = scalar_lea.vmem [#allocation2], %s615_s30  ;;  %p1150_p11 = pnand %p704_p6, %p38_p10 }
  0x5d   : > { %s204_s6 = sshll.u32 %s196_s5, 4  ;;  %s1156_s8 = scalar_lea.sflag [#allocation3], %s192_s24  ;;  %s1154_s6 = int_to_ptr.vmem [resolvable:$true] %s204_s6 }
  0x5e   : > { %s843_s9 = scalar_lea.hbm %s1148_s29, 512  ;;  %p845_p9 = pneg %p1150_p11 }
  0x5f   : > { %p844_p7 = scmp.ne.s32.totalorder %s1148_s29, %s843_s9  ;;  %s848_s26 = scalar_lea.hbm %s1268_s0, 1024 }
  0x60   : > { %p849_p1 = scmp.lt.u32.totalorder %s1148_s29, %s1268_s0  ;;  %p850_p2 = scmp.lt.u32.totalorder %s848_s26, %s843_s9 }
  0x61   : > { %p846_p12 = pnand %p845_p9, %p844_p7  ;;  %p852_p8 = scmp.lt.u32.totalorder %s843_s9, %s1148_s29 }
  0x62   : > { %p851_p4 = por %p850_p2, %p849_p1 }
  0x63   : > { %p847_p0 = pneg %p846_p12 }
  0x64   : > { %p853_p13 = por %p852_p8, %p851_p4 }
  0x66   : > { %p854_p6 = pnand %p853_p13, %p847_p0 }
  0x68   : > { %857 = shalt.err (!%p854_p6)
}
  0x69   : > { %s858_s24 = scalar_lea.vmem %s1154_s6, 512  ;;  %s954_s30 = smov [#allocation2]  }
  0x6a   : > { %p859_p10 = scmp.ne.s32.totalorder %s1154_s6, %s858_s24  ;;  %s863_s14 = sshll.u32 %s954_s30, 4  ;;  %s864_s14 = int_to_ptr.vmem [resolvable:$false] %s863_s14 }
  0x6b   : > { %s865_s20 = scalar_lea.vmem %s864_s14, 1024  ;;  %p866_p12 = scmp.lt.s32.totalorder %s1154_s6, %s864_s14 }
  0x6c   : > { %p861_p3 = pnand %p859_p10, %p845_p9  ;;  %p867_p1 = scmp.lt.s32.totalorder %s865_s20, %s858_s24 }
  0x6e   : > { %p862_p7 = pneg %p861_p3  ;;  %p868_p2 = por %p867_p1, %p866_p12 }
  0x70   : > { %p869_p4 = pnand %p868_p2, %p862_p7 }
  0x72   : > { %872 = shalt.err (!%p869_p4)
}
  0x73   : > { %s955_s5 = smov 128   ;;  %s956_s9 = smov 8  }
  0x74   : > { %696 = dma.hbm_to_vmem [thread:$0]  (!%p1150_p11), %s1148_s29, 512, %s1154_s6, %s1156_s8, %s955_s5, %s955_s5, %s956_s9  }
  0x75   : > { %p1284_p9 = scmp.ne.s32.totalorder %s1278_s23, 0 }
  0x76   : > { %s1187_s28 = sand.u32 (!%p1284_p9), 1, %s939_s16   ;;  %p1285_p0 = scmp.ne.s32.totalorder (!%p1284_p9), %s1276_s21, 0 }
  0x77   : > { %216 = sbr.rel (%p1284_p9) target bundleno = 925 (0x39d), region = 36  ;;  %s620_s11 = sshll.u32 (!%p1284_p9), %s1187_s28, 5 }
  0x78   : > { %s219_s26 = scalar_lea.sflag (!%p1284_p9), [#allocation3], %s1187_s28  ;;  %s222_s25 = scalar_lea.vmem (!%p1284_p9), [#allocation2], %s620_s11 }
  0x7e   : > { %918 = dma.done.wait (%p1285_p0), %s219_s26, 512  }
  0x7f   : > { %920 = vsyncadd (%p1285_p0), %s219_s26, 4294966784  ;;  %p1286_p8 = scmp.eq.s32.totalorder %s1009_s19, 0 }
  0x81   : > { %922 = dma.done.wait (%p1286_p8), [#allocation6], 384   ;;  %p1287_p11 = pmov %p1286_p8 }
  0x82   : > { %p1288_p13 = pmov %p1286_p8 }
  0x83   : > { %924 = vsyncadd (%p1287_p11), [#allocation6], 4294966912 }
  0x84   : > { %926 = dma.done.wait (%p1288_p13), [#allocation9], 256   ;;  %p1289_p6 = pmov %p1286_p8 }
  0x85   : > { %v957_v0 = vmov 0.0   ;;  %vm958_vm0 = vmmov 0   ;;  %v753_v1 = vld [vmem:[#allocation5] sm:$0xff]   ;;  %vm270_vm1 = vcmask 261120   ;;  %v754_v2 = vld [vmem:[#allocation5 + $0x8] sm:$0xff]   ;;  %v268_v5 = vld [vmem:[%s222_s25 + $0x10] sm:$0xff]  ;;  %v455_v57 = vlaneseq }
  0x86   : > { %928 = vsyncadd (%p1289_p6), [#allocation9], 4294967040  ;;  %651 = vmatprep.subr.bf16.mxu0 %v957_v0  ;;  %655 = vmatprep.mubr.msk.bf16.mxu0 %vm958_vm0, %v957_v0  ;;  %v266_v3 = vld [vmem:[%s222_s25] sm:$0xff]  ;;  %v267_v4 = vld [vmem:[%s222_s25 + $0x8] sm:$0xff]  ;;  %v280_v9 = vsel %vm270_vm1, %v268_v5, 0.0  ;;  %vm299_vm2 = vcmask 1041409  }
  0x87   : > { %659 = vmatprep.subr.bf16.mxu1 %v957_v0  ;;  %663 = vmatprep.mubr.msk.bf16.mxu1 %vm958_vm0, %v957_v0  ;;  %v269_v6 = vld [vmem:[%s222_s25 + $0x18] sm:$0xff]  ;;  %v271_v7 = vsel %vm270_vm1, %v266_v3, 0.0  ;;  %v272_v8 = vsel %vm270_vm1, %v267_v4, 0.0  ;;  %v628_v31 = vld [vmem:[#allocation7] ss:$0 sm:$0xff]  ;;  %vm362_vm3 = vcmask 254976  }
  0x88   : > { %652 = vmatpush3.bf16.msra.mxu0 %v753_v1  ;;  %v273_v10 = vadd.f32 %v272_v8, %v271_v7  ;;  %v281_v11 = vsel %vm270_vm1, %v269_v6, 0.0  ;;  %v755_v43 = vld [vmem:[#allocation8] sm:$0xff]   ;;  %v756_v44 = vld [vmem:[#allocation8 + $0x8] sm:$0xff]   ;;  %v629_v49 = vld [vmem:[#allocation7 + $0x1] ss:$0 sm:$0xff]  ;;  %v456_v59 = vshrl.u32 %v455_v57, 7 }
  0x89   : > { %653 = vmatprep.subr.bf16.mxu0 %v957_v0  ;;  %v282_v12 = vadd.f32 %v281_v11, %v280_v9  ;;  %660 = vmatpush3.bf16.msra.mxu1 %v755_v43  ;;  %v630_v51 = vld [vmem:[#allocation7 + $0x2] ss:$0 sm:$0xff]  ;;  %v959_v55 = vmov 1966171168   ;;  %v631_v60 = vld [vmem:[#allocation7 + $0x3] ss:$0 sm:$0xff] }
  0x8a   : > { %v274_v13 = vrot.slane %v273_v10, 4  ;;  %661 = vmatprep.subr.bf16.mxu1 %v957_v0  ;;  %v453_v56 = vunpack.c.l.s4 %v959_v55  ;;  %s624_s21 = sshll.u32 %s1187_s28, 6  ;;  %v476_v3 = vsub.s32 0, %v456_v59  ;;  %s644_s23 = sshll.u32 %s1009_s19, 10 }
  0x8b   : > { %v283_v14 = vrot.slane %v282_v12, 4  ;;  %s258_s29 = scalar_lea.vmem [#allocation10], %s624_s21  ;;  %s1214_s27 = scalar_lea.hbm %s1272_s4, %s644_s23 }
  0x8c   : > { %654 = vmatpush3.bf16.msra.mxu0 %v754_v2  ;;  %v275_v15 = vadd.f32 %v274_v13, %v273_v10  ;;  %v454_v58 = vunpack.c.0.s8 %v453_v56  ;;  %s507_s6 = sshll.u32 %s258_s29, 4  ;;  %s493_s19 = scalar_lea.sflag [#allocation4], %s1187_s28  ;;  %s1216_s6 = int_to_ptr.vmem [resolvable:$true] %s507_s6 }
  0x8d   : > { %v284_v16 = vadd.f32 %v283_v14, %v282_v12  ;;  %662 = vmatpush3.bf16.msra.mxu1 %v756_v44  ;;  %s873_s24 = scalar_lea.vmem %s1216_s6, 1024  ;;  %s960_s30 = smov [#allocation10]  }
  0x8e   : > { %v276_v17 = vrot.slane %v275_v15, 2  ;;  %v457_v61 = vsub.s32 %v454_v58, %v456_v59  ;;  %p874_p10 = scmp.ne.s32.totalorder %s1216_s6, %s873_s24  ;;  %s877_s14 = sshll.u32 %s960_s30, 4  ;;  %s878_s14 = int_to_ptr.vmem [resolvable:$false] %s877_s14 }
  0x8f   : > { %v285_v18 = vrot.slane %v284_v16, 2  ;;  %s879_s20 = scalar_lea.vmem %s878_s14, 2048  ;;  %p880_p12 = scmp.lt.s32.totalorder %s1216_s6, %s878_s14 }
  0x90   : > { %v277_v19 = vadd.f32 %v276_v17, %v275_v15  ;;  %p875_p3 = pnand %p874_p10, %p1139_p5  ;;  %p881_p1 = scmp.lt.s32.totalorder %s879_s20, %s873_s24 }
  0x91   : > { %v286_v20 = vadd.f32 %v285_v18, %v284_v16 }
  0x92   : > { %v278_v21 = vrot.slane %v277_v19, 1  ;;  %p876_p7 = pneg %p875_p3  ;;  %p882_p2 = por %p881_p1, %p880_p12 }
  0x93   : > { %v287_v22 = vrot.slane %v286_v20, 1 }
  0x94   : > { %v279_v23 = vadd.f32 %v278_v21, %v277_v19  ;;  %p883_p4 = pnand %p882_p2, %p876_p7 }
  0x95   : > { %v288_v24 = vadd.f32 %v287_v22, %v286_v20 }
  0x96   : > { %v289_v25 = vpack.c.bf16 %v279_v23, %v279_v23 }
  0x97   : > { %v290_v26 = vpack.c.bf16 %v288_v24, %v288_v24 }
  0x98   : > { %v297_v27 = vunpack.c.l.b16 %v289_v25 }
  0x99   : > { %v298_v28 = vunpack.c.l.b16 %v290_v26 }
  0x9b   : > { %v300_v29 = vsel %vm299_vm2, %v298_v28, %v297_v27 }
  0x9c   : > { %v301_v30 = vpack.c.b16 %v300_v29, %v300_v29 }
  0x9e   : > { %656 = vmatmul.mubr.msk.bf16.vlgmr.msra.gmra.mrb[0].mxu0 %vm270_vm1, %v301_v30 }
 0x171   : > { %v351_v32 = vpop.f32.mrb[0].mxu0 }
 0x172   : > { %v361_v33 = vadd.f32 %v628_v31, %v351_v32  ;;  %v657_v34 = vpop.f32.mrb[1].mxu0 }
 0x173   : > { %v354_v35 = vpop.f32.mrb[2].mxu0 }
 0x174   : > { %v658_v36 = vpop.f32.mrb[3].mxu0  ;;  %v363_v37 = vsel %vm362_vm3, %v361_v33, 0.0 }
 0x175   : > { %364 = vadd.xlane.f32.xlu0 %v363_v37 }
 0x202   : > { %v365_v38 = vpop.xlane.xlu0 %364 }
 0x203   : > { %v367_v39 = vmul.f32 0.03125, %v365_v38 }
 0x205   : > { %v368_v40 = vsub.f32 %v361_v33, %v367_v39 }
 0x207   : > { %v369_v41 = vmul.f32 %v368_v40, %v368_v40 }
 0x209   : > { %v370_v42 = vsel %vm362_vm3, %v369_v41, 0.0 }
 0x20a   : > { %371 = vadd.xlane.f32.xlu0 %v370_v42 }
 0x297   : > { %v372_v45 = vpop.xlane.xlu0 %371 }
 0x298   : > { %v373_v46 = vmul.f32 0.03125, %v372_v45 }
 0x29a   : > { %v374_v47 = vadd.f32 1e-05, %v373_v46 }
 0x29c   : > { %757 = vrsqrt.f32 %v374_v47 }
 0x2a6   : > { %v758_v48 = vpop.eup %757 }
 0x2a7   : > { %v376_v50 = vmul.f32 %v758_v48, %v368_v40 }
 0x2a9   : > { %v381_v52 = vmul.f32 %v629_v49, %v376_v50 }
 0x2ab   : > { %v386_v53 = vadd.f32 %v630_v51, %v381_v52 }
 0x2ad   : > { %v387_v54 = vpack.c.bf16 %v386_v53, %v386_v53 }
 0x2af   : > { %664 = vmatmul.mubr.msk.bf16.vlgmr.msra.gmra.mrb[0].mxu1 %vm270_vm1, %v387_v54 }
 0x382   : > { %v445_v62 = vpop.f32.mrb[0].mxu1 }
 0x383   : > { %v446_v63 = vadd.f32 %v631_v60, %v445_v62  ;;  %v665_v0 = vpop.f32.mrb[1].mxu1 }
 0x384   : > { %v448_v1 = vpop.f32.mrb[2].mxu1 }
 0x385   : > { %v458_v2 = vrot.slane %v446_v63, %v457_v61  ;;  %v666_v4 = vpop.f32.mrb[3].mxu1 }
 0x387   : > { %v459_v5 = vcombine.high %v458_v2, %v458_v2  ;;  %v466_v6 = vrot.slane %v458_v2, %v457_v61 }
 0x389   : > { %v473_v7 = vrot.slane %v459_v5, %v457_v61  ;;  %v477_v8 = vrot.slane %v466_v6, %v476_v3 }
 0x38b   : > { %v481_v9 = vrot.slane %v473_v7, %v476_v3  ;;  %484 = vst.msk [vmem:[%s258_s29] sm:$0xff] %vm270_vm1, %v477_v8  ;;  %485 = vst.msk [vmem:[%s258_s29 + $0x8] sm:$0xff] %vm270_vm1, %v477_v8 }
 0x38c   : > { %486 = vst.msk [vmem:[%s258_s29 + $0x10] sm:$0xff] %vm270_vm1, %v477_v8  ;;  %487 = vst.msk [vmem:[%s258_s29 + $0x18] sm:$0xff] %vm270_vm1, %v477_v8 }
 0x38d   : > { %488 = vst.msk [vmem:[%s258_s29 + $0x20] sm:$0xff] %vm270_vm1, %v481_v9  ;;  %489 = vst.msk [vmem:[%s258_s29 + $0x28] sm:$0xff] %vm270_vm1, %v481_v9 }
 0x38e   : > { %490 = vst.msk [vmem:[%s258_s29 + $0x30] sm:$0xff] %vm270_vm1, %v481_v9  ;;  %491 = vst.msk [vmem:[%s258_s29 + $0x38] sm:$0xff] %vm270_vm1, %v481_v9 }
 0x38f   : > { %886 = shalt.err (!%p883_p4)
}
 0x390   : > { %s887_s5 = scalar_lea.hbm %s1214_s27, 1024  ;;  %s891_s26 = scalar_lea.hbm %s1272_s4, 2048 }
 0x391   : > { %p888_p9 = scmp.ne.s32.totalorder %s1214_s27, %s887_s5  ;;  %p892_p11 = scmp.lt.u32.totalorder %s1214_s27, %s1272_s4 }
 0x392   : > { %p893_p13 = scmp.lt.u32.totalorder %s891_s26, %s887_s5  ;;  %p895_p10 = scmp.lt.u32.totalorder %s887_s5, %s1214_s27 }
 0x393   : > { %p889_p0 = pnand %p888_p9, %p1139_p5 }
 0x394   : > { %p894_p6 = por %p893_p13, %p892_p11 }
 0x395   : > { %p890_p8 = pneg %p889_p0 }
 0x396   : > { %p896_p3 = por %p895_p10, %p894_p6 }
 0x398   : > { %p897_p7 = pnand %p896_p3, %p890_p8 }
 0x39a   : > { %900 = shalt.err (!%p897_p7)
}
 0x39b   : > { %s961_s23 = smov 128   ;;  %s962_s29 = smov 8  }
 0x39c   : > { %681 = dma.vmem_to_hbm [thread:$0]  (%p1139_p5), %s1216_s6, 1024, %s1214_s27, %s493_s19, %s961_s23, %s961_s23, %s962_s29  }
 0x39d PF: > { %s522_s7 = sand.u32 1, %s935_s15   ;;  %p1290_p12 = scmp.ne.s32.totalorder %s1277_s22, 0 }
 0x39e   : > { %p1291_p1 = scmp.ge.s32.totalorder %s947_s18, 2  ;;  %s523_s8 = scalar_lea.sflag [#allocation4], %s522_s7 }
 0x3a0   : > { %p698_p2 = pnand %p1291_p1, %p1290_p12 }
 0x3a2   : > { %930 = dma.done.wait (!%p698_p2), %s523_s8, 1024  }
 0x3a3   : > { %932 = vsyncadd (!%p698_p2), %s523_s8, 4294966272  ;;  %p19_p4 = scmp.ge.s32.totalorder %s1125_s10, 4   ;;  %s1292_s15 = smov %s939_s16 }
 0x3a4   : > { %s1293_s16 = smov %s943_s17  ;;  %s1294_s17 = smov %s1135_s12 }
 0x3a5   : > { %s1295_s18 = smov %s1125_s10  ;;  %21 = sbr.rel (!%p19_p4) target bundleno = 7 (0x7), region = 93 }
 0x3ac   :  { %528 = vsyncpa [#allocation3], 1 }
 0x3ad   :  { %530 = vsyncpa [#allocation3 + $0x1], 1 }
 0x3ae   :  { %531 = vsyncpa [#allocation6], 1 }
 0x3af   :  { %532 = vsyncpa [#allocation9], 1 }
 0x3b0   :  { %533 = vsyncpa [#allocation4], 1 }
 0x3b1   :  { %535 = vsyncpa [#allocation4 + $0x1], 1 }

// kernel: tpu_custom_call.1
= control target key start
LH: loop header
LB: loop body
LE: loop exit
PB: predicated region body
PF: predicated region fallthrough
CT: control target
= control target key end

     0   :  { %9 = vsyncpa [#allocation3], 0  ;;  %s1268_s0 = inlined_call_operand.hbm [shape: f32[4,16,32], index: 0, kind: input, shape index: {}]   ;;  %s1269_s1 = inlined_call_operand.hbm [shape: bf16[32,32], index: 1, kind: input, shape index: {}]   ;;  %s1270_s2 = inlined_call_operand.hbm [shape: f32[8,32], index: 2, kind: input, shape index: {}]   ;;  %s1271_s3 = inlined_call_operand.hbm [shape: bf16[32,32], index: 3, kind: input, shape index: {}]   ;;  %s1272_s4 = inlined_call_operand.hbm [shape: f32[4,32,32], index: 4, kind: output, shape index: {}]  }
   0x1   :  { %11 = vsyncpa [#allocation3 + $0x1], 0 }
   0x2   :  { %12 = vsyncpa [#allocation6], 0 }
   0x3   :  { %13 = vsyncpa [#allocation9], 0 }
   0x4   :  { %14 = vsyncpa [#allocation4], 0 }
   0x5   :  { %16 = vsyncpa [#allocation4 + $0x1], 0  ;;  %s988_s15 = smov 0   ;;  %s990_s16 = smov 0  }
   0x6   :  { %s992_s17 = smov 0   ;;  %s994_s18 = smov 0  }
   0x7 LB: > { %s1009_s19 = sadd.s32 4294967295, %s947_s18   ;;  %s609_s20 = sadd.s32 4294967294, %s947_s18   ;;  %s947_s18 = sphi %s994_s18, %s1295_s18   ;;  %s943_s17 = sphi %s992_s17, %s1294_s17   ;;  %s939_s16 = sphi %s990_s16, %s1293_s16   ;;  %s935_s15 = sphi %s988_s15, %s1292_s15  }
   0x8   : > { %p42_p0 = scmp.ne.s32.totalorder %s939_s16, %s935_s15  ;;  %p1273_p1 = scmp.eq.s32.totalorder %s1009_s19, 0 }
   0x9   : > { %p135_p3 = scmp.eq.s32.totalorder %s609_s20, 1  ;;  %p610_p5 = scmp.ge.s32.totalorder %s947_s18, 1 }
   0xa   : > { %p1018_p4 = por %p1273_p1, %p42_p0  ;;  %p142_p7 = scmp.lt.s32.totalorder %s947_s18, 3 }
   0xb   : > { %p1023_p6 = por %p135_p3, %p42_p0  ;;  %s949_s24 = smov [#allocation5]  }
   0xc   : > { %s1276_s21 = scalar_select %p1018_p4, 1, 0 }
   0xd   : > { %s1277_s22 = scalar_select %p1023_p6, 1, 0 }
   0xe   : > { %p1028_p8 = pnand %p610_p5, %p142_p7  ;;  %s154_s25 = sshll.u32 %s949_s24, 4  ;;  %s1032_s25 = int_to_ptr.vmem [resolvable:$true] %s154_s25 }
   0xf   : > { %s950_s27 = smov [#allocation7]   ;;  %s951_s29 = smov [#allocation8]  }
  0x10   : > { %s1278_s23 = scalar_select %p1028_p8, 1, 0 }
  0x11   : > { %p683_p9 = pneg %p1028_p8  ;;  %s168_s28 = sshll.u32 %s950_s27, 4  ;;  %s1043_s28 = int_to_ptr.vmem [resolvable:$true] %s168_s28 }
  0x12   : > { %s1045_s30 = sshll.u32 %s951_s29, 4  ;;  %s759_s7 = scalar_lea.hbm %s1269_s1, 256  ;;  %s179_s30 = int_to_ptr.vmem [resolvable:$true] %s1045_s30 }
  0x13   : > { %p1039_p11 = pnand %p683_p9, %p1273_p1  ;;  %p760_p12 = scmp.ne.s32.totalorder %s1269_s1, %s759_s7 }
  0x14   : > { %p766_p5 = scmp.lt.u32.totalorder %s759_s7, %s1269_s1 }
  0x15   : > { %p1055_p13 = pneg %p1039_p11 }
  0x17   : > { %p762_p0 = pnand %p1055_p13, %p760_p12 }
  0x19   : > { %p763_p3 = pneg %p762_p0 }
  0x1b   : > { %p768_p7 = pnand %p766_p5, %p763_p3 }
  0x1d   : > { %771 = shalt.err (!%p768_p7)
}
  0x1e   : > { %s772_s13 = scalar_lea.vmem %s1032_s25, 256  ;;  %p780_p2 = scmp.lt.s32.totalorder %s1032_s25, %s1032_s25 }
  0x1f   : > { %p773_p9 = scmp.ne.s32.totalorder %s1032_s25, %s772_s13  ;;  %p781_p6 = scmp.lt.s32.totalorder %s772_s13, %s772_s13 }
  0x21   : > { %p775_p10 = pnand %p773_p9, %p1055_p13  ;;  %p782_p12 = por %p781_p6, %p780_p2 }
  0x23   : > { %p776_p1 = pneg %p775_p10 }
  0x25   : > { %p783_p0 = pnand %p782_p12, %p776_p1 }
  0x27   : > { %786 = shalt.err (!%p783_p0)
}
  0x28   : > { %s952_s14 = smov 64   ;;  %s953_s20 = smov 4  }
  0x29   : > { %686 = dma.hbm_to_vmem [thread:$0]  (!%p1039_p11), %s1269_s1, 256, %s1032_s25, [#allocation6], %s952_s14, %s952_s14, %s953_s20  }
  0x2a   : > { %s787_s6 = scalar_lea.hbm %s1270_s2, 128 }
  0x2b   : > { %p788_p1 = scmp.ne.s32.totalorder %s1270_s2, %s787_s6  ;;  %p794_p10 = scmp.lt.u32.totalorder %s787_s6, %s1270_s2 }
  0x2d   : > { %p790_p2 = pnand %p788_p1, %p1055_p13 }
  0x2f   : > { %p791_p6 = pneg %p790_p2 }
  0x31   : > { %p796_p3 = pnand %p794_p10, %p791_p6 }
  0x33   : > { %799 = shalt.err (!%p796_p3)
}
  0x34   : > { %s800_s25 = scalar_lea.vmem %s1043_s28, 128  ;;  %p808_p12 = scmp.lt.s32.totalorder %s1043_s28, %s1043_s28 }
  0x35   : > { %p801_p5 = scmp.ne.s32.totalorder %s1043_s28, %s800_s25  ;;  %p809_p0 = scmp.lt.s32.totalorder %s800_s25, %s800_s25 }
  0x37   : > { %p803_p7 = pnand %p801_p5, %p1055_p13  ;;  %p810_p1 = por %p809_p0, %p808_p12 }
  0x39   : > { %p804_p9 = pneg %p803_p7 }
  0x3b   : > { %p811_p2 = pnand %p810_p1, %p804_p9 }
  0x3d   : > { %814 = shalt.err (!%p811_p2)
}
  0x3e   : > { %689 = dma.hbm_to_vmem [thread:$0]  (!%p1039_p11), %s1270_s2, 128, %s1043_s28, [#allocation6]  }
  0x3f   : > { %s815_s29 = scalar_lea.hbm %s1271_s3, 256 }
  0x40   : > { %p816_p6 = scmp.ne.s32.totalorder %s1271_s3, %s815_s29  ;;  %p822_p5 = scmp.lt.u32.totalorder %s815_s29, %s1271_s3 }
  0x42   : > { %p818_p10 = pnand %p816_p6, %p1055_p13 }
  0x44   : > { %p819_p3 = pneg %p818_p10 }
  0x46   : > { %p824_p7 = pnand %p822_p5, %p819_p3 }
  0x48   : > { %827 = shalt.err (!%p824_p7)
}
  0x49   : > { %s828_s9 = scalar_lea.vmem %s179_s30, 256  ;;  %p836_p1 = scmp.lt.s32.totalorder %s179_s30, %s179_s30 }
  0x4a   : > { %p829_p9 = scmp.ne.s32.totalorder %s179_s30, %s828_s9  ;;  %p837_p2 = scmp.lt.s32.totalorder %s828_s9, %s828_s9 }
  0x4c   : > { %p831_p12 = pnand %p829_p9, %p1055_p13  ;;  %p838_p4 = por %p837_p2, %p836_p1 }
  0x4e   : > { %p832_p0 = pneg %p831_p12 }
  0x50   : > { %p839_p8 = pnand %p838_p4, %p832_p0 }
  0x52   : > { %842 = shalt.err (!%p839_p8)
}
  0x53   : > { %692 = dma.hbm_to_vmem [thread:$0]  (!%p1039_p11), %s1271_s3, 256, %s179_s30, [#allocation9], %s952_s14, %s952_s14, %s953_s20  }
  0x54   : > { %s1125_s10 = sadd.s32 1, %s947_s18   ;;  %s29_s25 = sadd.s32 1, %s943_s17 }
  0x55   : > { %s26_s26 = ssub.s32 %s947_s18, %s1125_s10  ;;  %p36_p8 = scmp.ne.s32.totalorder %s943_s17, %s939_s16 }
  0x56   : > { %p27_p4 = scmp.eq.s32.totalorder %s26_s26, 0  ;;  %p37_p13 = scmp.eq.s32.totalorder %s947_s18, 0 }
  0x57   : > { %p704_p6 = scmp.lt.s32.totalorder %s947_s18, 2  ;;  %p1281_p3 = scmp.eq.s32.totalorder %s1009_s19, 1 }
  0x58   : > { %s1135_s12 = scalar_select %p27_p4, %s943_s17, %s29_s25  }
  0x59   : > { %p38_p10 = por %p37_p13, %p36_p8  ;;  %p1139_p5 = por %p1281_p3, %p36_p8 }
  0x5a   : > { %s192_s24 = sand.u32 1, %s943_s17   ;;  %s642_s27 = sshll.u32 %s947_s18, 9 }
  0x5b   : > { %s615_s30 = sshll.u32 %s192_s24, 5  ;;  %s1148_s29 = scalar_lea.hbm %s1268_s0, %s642_s27 }
  0x5c   : > { %s196_s5 = scalar_lea.vmem [#allocation2], %s615_s30  ;;  %p1150_p11 = pnand %p704_p6, %p38_p10 }
  0x5d   : > { %s204_s6 = sshll.u32 %s196_s5, 4  ;;  %s1156_s8 = scalar_lea.sflag [#allocation3], %s192_s24  ;;  %s1154_s6 = int_to_ptr.vmem [resolvable:$true] %s204_s6 }
  0x5e   : > { %s843_s9 = scalar_lea.hbm %s1148_s29, 512  ;;  %p845_p9 = pneg %p1150_p11 }
  0x5f   : > { %p844_p7 = scmp.ne.s32.totalorder %s1148_s29, %s843_s9  ;;  %s848_s26 = scalar_lea.hbm %s1268_s0, 1024 }
  0x60   : > { %p849_p1 = scmp.lt.u32.totalorder %s1148_s29, %s1268_s0  ;;  %p850_p2 = scmp.lt.u32.totalorder %s848_s26, %s843_s9 }
  0x61   : > { %p846_p12 = pnand %p845_p9, %p844_p7  ;;  %p852_p8 = scmp.lt.u32.totalorder %s843_s9, %s1148_s29 }
  0x62   : > { %p851_p4 = por %p850_p2, %p849_p1 }
  0x63   : > { %p847_p0 = pneg %p846_p12 }
  0x64   : > { %p853_p13 = por %p852_p8, %p851_p4 }
  0x66   : > { %p854_p6 = pnand %p853_p13, %p847_p0 }
  0x68   : > { %857 = shalt.err (!%p854_p6)
}
  0x69   : > { %s858_s24 = scalar_lea.vmem %s1154_s6, 512  ;;  %s954_s30 = smov [#allocation2]  }
  0x6a   : > { %p859_p10 = scmp.ne.s32.totalorder %s1154_s6, %s858_s24  ;;  %s863_s14 = sshll.u32 %s954_s30, 4  ;;  %s864_s14 = int_to_ptr.vmem [resolvable:$false] %s863_s14 }
  0x6b   : > { %s865_s20 = scalar_lea.vmem %s864_s14, 1024  ;;  %p866_p12 = scmp.lt.s32.totalorder %s1154_s6, %s864_s14 }
  0x6c   : > { %p861_p3 = pnand %p859_p10, %p845_p9  ;;  %p867_p1 = scmp.lt.s32.totalorder %s865_s20, %s858_s24 }
  0x6e   : > { %p862_p7 = pneg %p861_p3  ;;  %p868_p2 = por %p867_p1, %p866_p12 }
  0x70   : > { %p869_p4 = pnand %p868_p2, %p862_p7 }
  0x72   : > { %872 = shalt.err (!%p869_p4)
}
  0x73   : > { %s955_s5 = smov 128   ;;  %s956_s9 = smov 8  }
  0x74   : > { %696 = dma.hbm_to_vmem [thread:$0]  (!%p1150_p11), %s1148_s29, 512, %s1154_s6, %s1156_s8, %s955_s5, %s955_s5, %s956_s9  }
  0x75   : > { %p1284_p9 = scmp.ne.s32.totalorder %s1278_s23, 0 }
  0x76   : > { %s1187_s28 = sand.u32 (!%p1284_p9), 1, %s939_s16   ;;  %p1285_p0 = scmp.ne.s32.totalorder (!%p1284_p9), %s1276_s21, 0 }
  0x77   : > { %216 = sbr.rel (%p1284_p9) target bundleno = 925 (0x39d), region = 36  ;;  %s620_s11 = sshll.u32 (!%p1284_p9), %s1187_s28, 5 }
  0x78   : > { %s219_s26 = scalar_lea.sflag (!%p1284_p9), [#allocation3], %s1187_s28  ;;  %s222_s25 = scalar_lea.vmem (!%p1284_p9), [#allocation2], %s620_s11 }
  0x7e   : > { %918 = dma.done.wait (%p1285_p0), %s219_s26, 512  }
  0x7f   : > { %920 = vsyncadd (%p1285_p0), %s219_s26, 4294966784  ;;  %p1286_p8 = scmp.eq.s32.totalorder %s1009_s19, 0 }
  0x81   : > { %922 = dma.done.wait (%p1286_p8), [#allocation6], 384   ;;  %p1287_p11 = pmov %p1286_p8 }
  0x82   : > { %p1288_p13 = pmov %p1286_p8 }
  0x83   : > { %924 = vsyncadd (%p1287_p11), [#allocation6], 4294966912 }
  0x84   : > { %926 = dma.done.wait (%p1288_p13), [#allocation9], 256   ;;  %p1289_p6 = pmov %p1286_p8 }
  0x85   : > { %v957_v0 = vmov 0.0   ;;  %vm958_vm0 = vmmov 0   ;;  %v753_v1 = vld [vmem:[#allocation5] sm:$0xff]   ;;  %vm270_vm1 = vcmask 261120   ;;  %v754_v2 = vld [vmem:[#allocation5 + $0x8] sm:$0xff]   ;;  %v268_v5 = vld [vmem:[%s222_s25 + $0x10] sm:$0xff]  ;;  %v455_v57 = vlaneseq }
  0x86   : > { %928 = vsyncadd (%p1289_p6), [#allocation9], 4294967040  ;;  %651 = vmatprep.subr.bf16.mxu0 %v957_v0  ;;  %655 = vmatprep.mubr.msk.bf16.mxu0 %vm958_vm0, %v957_v0  ;;  %v266_v3 = vld [vmem:[%s222_s25] sm:$0xff]  ;;  %v267_v4 = vld [vmem:[%s222_s25 + $0x8] sm:$0xff]  ;;  %v280_v9 = vsel %vm270_vm1, %v268_v5, 0.0  ;;  %vm299_vm2 = vcmask 1041409  }
  0x87   : > { %659 = vmatprep.subr.bf16.mxu1 %v957_v0  ;;  %663 = vmatprep.mubr.msk.bf16.mxu1 %vm958_vm0, %v957_v0  ;;  %v269_v6 = vld [vmem:[%s222_s25 + $0x18] sm:$0xff]  ;;  %v271_v7 = vsel %vm270_vm1, %v266_v3, 0.0  ;;  %v272_v8 = vsel %vm270_vm1, %v267_v4, 0.0  ;;  %v628_v31 = vld [vmem:[#allocation7] ss:$0 sm:$0xff]  ;;  %vm362_vm3 = vcmask 254976  }
  0x88   : > { %652 = vmatpush3.bf16.msra.mxu0 %v753_v1  ;;  %v273_v10 = vadd.f32 %v272_v8, %v271_v7  ;;  %v281_v11 = vsel %vm270_vm1, %v269_v6, 0.0  ;;  %v755_v43 = vld [vmem:[#allocation8] sm:$0xff]   ;;  %v756_v44 = vld [vmem:[#allocation8 + $0x8] sm:$0xff]   ;;  %v629_v49 = vld [vmem:[#allocation7 + $0x1] ss:$0 sm:$0xff]  ;;  %v456_v59 = vshrl.u32 %v455_v57, 7 }
  0x89   : > { %653 = vmatprep.subr.bf16.mxu0 %v957_v0  ;;  %v282_v12 = vadd.f32 %v281_v11, %v280_v9  ;;  %660 = vmatpush3.bf16.msra.mxu1 %v755_v43  ;;  %v630_v51 = vld [vmem:[#allocation7 + $0x2] ss:$0 sm:$0xff]  ;;  %v959_v55 = vmov 1966171168   ;;  %v631_v60 = vld [vmem:[#allocation7 + $0x3] ss:$0 sm:$0xff] }
  0x8a   : > { %v274_v13 = vrot.slane %v273_v10, 4  ;;  %661 = vmatprep.subr.bf16.mxu1 %v957_v0  ;;  %v453_v56 = vunpack.c.l.s4 %v959_v55  ;;  %s624_s21 = sshll.u32 %s1187_s28, 6  ;;  %v476_v3 = vsub.s32 0, %v456_v59  ;;  %s644_s23 = sshll.u32 %s1009_s19, 10 }
  0x8b   : > { %v283_v14 = vrot.slane %v282_v12, 4  ;;  %s258_s29 = scalar_lea.vmem [#allocation10], %s624_s21  ;;  %s1214_s27 = scalar_lea.hbm %s1272_s4, %s644_s23 }
  0x8c   : > { %654 = vmatpush3.bf16.msra.mxu0 %v754_v2  ;;  %v275_v15 = vadd.f32 %v274_v13, %v273_v10  ;;  %v454_v58 = vunpack.c.0.s8 %v453_v56  ;;  %s507_s6 = sshll.u32 %s258_s29, 4  ;;  %s493_s19 = scalar_lea.sflag [#allocation4], %s1187_s28  ;;  %s1216_s6 = int_to_ptr.vmem [resolvable:$true] %s507_s6 }
  0x8d   : > { %v284_v16 = vadd.f32 %v283_v14, %v282_v12  ;;  %662 = vmatpush3.bf16.msra.mxu1 %v756_v44  ;;  %s873_s24 = scalar_lea.vmem %s1216_s6, 1024  ;;  %s960_s30 = smov [#allocation10]  }
  0x8e   : > { %v276_v17 = vrot.slane %v275_v15, 2  ;;  %v457_v61 = vsub.s32 %v454_v58, %v456_v59  ;;  %p874_p10 = scmp.ne.s32.totalorder %s1216_s6, %s873_s24  ;;  %s877_s14 = sshll.u32 %s960_s30, 4  ;;  %s878_s14 = int_to_ptr.vmem [resolvable:$false] %s877_s14 }
  0x8f   : > { %v285_v18 = vrot.slane %v284_v16, 2  ;;  %s879_s20 = scalar_lea.vmem %s878_s14, 2048  ;;  %p880_p12 = scmp.lt.s32.totalorder %s1216_s6, %s878_s14 }
  0x90   : > { %v277_v19 = vadd.f32 %v276_v17, %v275_v15  ;;  %p875_p3 = pnand %p874_p10, %p1139_p5  ;;  %p881_p1 = scmp.lt.s32.totalorder %s879_s20, %s873_s24 }
  0x91   : > { %v286_v20 = vadd.f32 %v285_v18, %v284_v16 }
  0x92   : > { %v278_v21 = vrot.slane %v277_v19, 1  ;;  %p876_p7 = pneg %p875_p3  ;;  %p882_p2 = por %p881_p1, %p880_p12 }
  0x93   : > { %v287_v22 = vrot.slane %v286_v20, 1 }
  0x94   : > { %v279_v23 = vadd.f32 %v278_v21, %v277_v19  ;;  %p883_p4 = pnand %p882_p2, %p876_p7 }
  0x95   : > { %v288_v24 = vadd.f32 %v287_v22, %v286_v20 }
  0x96   : > { %v289_v25 = vpack.c.bf16 %v279_v23, %v279_v23 }
  0x97   : > { %v290_v26 = vpack.c.bf16 %v288_v24, %v288_v24 }
  0x98   : > { %v297_v27 = vunpack.c.l.b16 %v289_v25 }
  0x99   : > { %v298_v28 = vunpack.c.l.b16 %v290_v26 }
  0x9b   : > { %v300_v29 = vsel %vm299_vm2, %v298_v28, %v297_v27 }
  0x9c   : > { %v301_v30 = vpack.c.b16 %v300_v29, %v300_v29 }
  0x9e   : > { %656 = vmatmul.mubr.msk.bf16.vlgmr.msra.gmra.mrb[0].mxu0 %vm270_vm1, %v301_v30 }
 0x171   : > { %v351_v32 = vpop.f32.mrb[0].mxu0 }
 0x172   : > { %v361_v33 = vadd.f32 %v628_v31, %v351_v32  ;;  %v657_v34 = vpop.f32.mrb[1].mxu0 }
 0x173   : > { %v354_v35 = vpop.f32.mrb[2].mxu0 }
 0x174   : > { %v658_v36 = vpop.f32.mrb[3].mxu0  ;;  %v363_v37 = vsel %vm362_vm3, %v361_v33, 0.0 }
 0x175   : > { %364 = vadd.xlane.f32.xlu0 %v363_v37 }
 0x202   : > { %v365_v38 = vpop.xlane.xlu0 %364 }
 0x203   : > { %v367_v39 = vmul.f32 0.03125, %v365_v38 }
 0x205   : > { %v368_v40 = vsub.f32 %v361_v33, %v367_v39 }
 0x207   : > { %v369_v41 = vmul.f32 %v368_v40, %v368_v40 }
 0x209   : > { %v370_v42 = vsel %vm362_vm3, %v369_v41, 0.0 }
 0x20a   : > { %371 = vadd.xlane.f32.xlu0 %v370_v42 }
 0x297   : > { %v372_v45 = vpop.xlane.xlu0 %371 }
 0x298   : > { %v373_v46 = vmul.f32 0.03125, %v372_v45 }
 0x29a   : > { %v374_v47 = vadd.f32 1e-05, %v373_v46 }
 0x29c   : > { %757 = vrsqrt.f32 %v374_v47 }
 0x2a6   : > { %v758_v48 = vpop.eup %757 }
 0x2a7   : > { %v376_v50 = vmul.f32 %v758_v48, %v368_v40 }
 0x2a9   : > { %v381_v52 = vmul.f32 %v629_v49, %v376_v50 }
 0x2ab   : > { %v386_v53 = vadd.f32 %v630_v51, %v381_v52 }
 0x2ad   : > { %v387_v54 = vpack.c.bf16 %v386_v53, %v386_v53 }
 0x2af   : > { %664 = vmatmul.mubr.msk.bf16.vlgmr.msra.gmra.mrb[0].mxu1 %vm270_vm1, %v387_v54 }
 0x382   : > { %v445_v62 = vpop.f32.mrb[0].mxu1 }
 0x383   : > { %v446_v63 = vadd.f32 %v631_v60, %v445_v62  ;;  %v665_v0 = vpop.f32.mrb[1].mxu1 }
 0x384   : > { %v448_v1 = vpop.f32.mrb[2].mxu1 }
 0x385   : > { %v458_v2 = vrot.slane %v446_v63, %v457_v61  ;;  %v666_v4 = vpop.f32.mrb[3].mxu1 }
 0x387   : > { %v459_v5 = vcombine.high %v458_v2, %v458_v2  ;;  %v466_v6 = vrot.slane %v458_v2, %v457_v61 }
 0x389   : > { %v473_v7 = vrot.slane %v459_v5, %v457_v61  ;;  %v477_v8 = vrot.slane %v466_v6, %v476_v3 }
 0x38b   : > { %v481_v9 = vrot.slane %v473_v7, %v476_v3  ;;  %484 = vst.msk [vmem:[%s258_s29] sm:$0xff] %vm270_vm1, %v477_v8  ;;  %485 = vst.msk [vmem:[%s258_s29 + $0x8] sm:$0xff] %vm270_vm1, %v477_v8 }
 0x38c   : > { %486 = vst.msk [vmem:[%s258_s29 + $0x10] sm:$0xff] %vm270_vm1, %v477_v8  ;;  %487 = vst.msk [vmem:[%s258_s29 + $0x18] sm:$0xff] %vm270_vm1, %v477_v8 }
 0x38d   : > { %488 = vst.msk [vmem:[%s258_s29 + $0x20] sm:$0xff] %vm270_vm1, %v481_v9  ;;  %489 = vst.msk [vmem:[%s258_s29 + $0x28] sm:$0xff] %vm270_vm1, %v481_v9 }
 0x38e   : > { %490 = vst.msk [vmem:[%s258_s29 + $0x30] sm:$0xff] %vm270_vm1, %v481_v9  ;;  %491 = vst.msk [vmem:[%s258_s29 + $0x38] sm:$0xff] %vm270_vm1, %v481_v9 }
 0x38f   : > { %886 = shalt.err (!%p883_p4)
}
 0x390   : > { %s887_s5 = scalar_lea.hbm %s1214_s27, 1024  ;;  %s891_s26 = scalar_lea.hbm %s1272_s4, 2048 }
 0x391   : > { %p888_p9 = scmp.ne.s32.totalorder %s1214_s27, %s887_s5  ;;  %p892_p11 = scmp.lt.u32.totalorder %s1214_s27, %s1272_s4 }
 0x392   : > { %p893_p13 = scmp.lt.u32.totalorder %s891_s26, %s887_s5  ;;  %p895_p10 = scmp.lt.u32.totalorder %s887_s5, %s1214_s27 }
 0x393   : > { %p889_p0 = pnand %p888_p9, %p1139_p5 }
 0x394   : > { %p894_p6 = por %p893_p13, %p892_p11 }
 0x395   : > { %p890_p8 = pneg %p889_p0 }
 0x396   : > { %p896_p3 = por %p895_p10, %p894_p6 }
 0x398   : > { %p897_p7 = pnand %p896_p3, %p890_p8 }
 0x39a   : > { %900 = shalt.err (!%p897_p7)
}
 0x39b   : > { %s961_s23 = smov 128   ;;  %s962_s29 = smov 8  }
 0x39c   : > { %681 = dma.vmem_to_hbm [thread:$0]  (%p1139_p5), %s1216_s6, 1024, %s1214_s27, %s493_s19, %s961_s23, %s961_s23, %s962_s29  }
 0x39d PF: > { %s522_s7 = sand.u32 1, %s935_s15   ;;  %p1290_p12 = scmp.ne.s32.totalorder %s1277_s22, 0 }
 0x39e   : > { %p1291_p1 = scmp.ge.s32.totalorder %s947_s18, 2  ;;  %s523_s8 = scalar_lea.sflag [#allocation4], %s522_s7 }
 0x3a0   : > { %p698_p2 = pnand %p1291_p1, %p1290_p12 }
 0x3a2   : > { %930 = dma.done.wait (!%p698_p2), %s523_s8, 1024  }
 0x3a3   : > { %932 = vsyncadd (!%p698_p2), %s523_s8, 4294966272  ;;  %p19_p4 = scmp.ge.s32.totalorder %s1125_s10, 4   ;;  %s1292_s15 = smov %s939_s16 }
 0x3a4   : > { %s1293_s16 = smov %s943_s17  ;;  %s1294_s17 = smov %s1135_s12 }
 0x3a5   : > { %s1295_s18 = smov %s1125_s10  ;;  %21 = sbr.rel (!%p19_p4) target bundleno = 7 (0x7), region = 93 }
 0x3ac   :  { %528 = vsyncpa [#allocation3], 1 }
 0x3ad   :  { %530 = vsyncpa [#allocation3 + $0x1], 1 }
 0x3ae   :  { %531 = vsyncpa [#allocation6], 1 }
 0x3af   :  { %532 = vsyncpa [#allocation9], 1 }
 0x3b0   :  { %533 = vsyncpa [#allocation4], 1 }
 0x3b1   :  { %535 = vsyncpa [#allocation4 + $0x1], 1 }

</bundles_post_ra>
